<compile_context>
chip_gen: v7x
topology: tpu7x:2x2x1
jax: 0.10.0
libtpu: 0.0.40
codegen_flags: <defaults>
</compile_context>

<pallas_src>
import jax
import jax.numpy as jnp
from jax import lax
from jax.experimental import pallas as pl
from jax.experimental.pallas import tpu as pltpu


# ----------------------------------------------------------------------------
# Kernels
# ----------------------------------------------------------------------------

def _fc_kernel(gt_ref, w_ref, b_ref, g_ref):
    """g = gt @ W^T + b, f32 accumulation on the MXU.

    gt_ref: (B, C) global track
    w_ref:  (C, C) PyTorch (out_features, in_features) layout
    b_ref:  (1, C) bias (zeros when use_linear_bias=False)
    g_ref:  (B, C) f32 output
    """
    g_ref[...] = lax.dot_general(
        gt_ref[...], w_ref[...],
        dimension_numbers=(((1,), (1,)), ((), ())),   # contract dim 1 of both == @ W.T
        preferred_element_type=jnp.float32,
    ) + b_ref[...]


def _bcast_add_kernel(g_ref, x_ref, o_ref):
    """o = x + g, with g a per-row (sublane) scalar splat across the lane axis.

    g_ref: (TR, 1)   f32 per-row add value
    x_ref: (TR, THW) activation tile
    o_ref: (TR, THW) output tile
    """
    o_ref[...] = (x_ref[...].astype(jnp.float32) + g_ref[...]).astype(o_ref.dtype)


# ----------------------------------------------------------------------------
# Tiling helpers
# ----------------------------------------------------------------------------

def _vmem_budget():
    """(per-tile byte budget, vmem_limit_bytes), generation-gated."""
    tile_budget = 2 * 1024 * 1024       # safe everywhere (incl. v7x 64 MiB VMEM)
    vmem_limit = 32 * 1024 * 1024
    try:
        info = pltpu.get_tpu_info()
        vmem = getattr(info, "vmem_capacity_bytes", 0)
        if vmem and vmem >= 100 * 1024 * 1024:   # v5e / v6e: 128 MiB physical
            tile_budget = 8 * 1024 * 1024
            vmem_limit = 64 * 1024 * 1024
    except Exception:
        pass
    return tile_budget, vmem_limit


def _pick_tiles(rows, hw, itemsize, budget_bytes, min_steps=8):
    """Pick (row_tile, hw_tile) for the (rows, hw) broadcast-add.

    * hw_tile: full extent when a minimal 8-row slab fits the budget,
      otherwise the largest multiple of 128 that does (lane-dense stores).
    * row_tile: as many rows as fit the budget, rounded to a sublane multiple
      of 8, but capped so the grid has >= min_steps steps when rows allow —
      pipelining only needs enough steps, not giant tiles.
    Non-dividing tiles are fine: the grid uses pl.cdiv and edge blocks mask.
    """
    if hw * 8 * itemsize <= budget_bytes:
        thw = hw
    else:
        thw = max(128, min(hw, (budget_bytes // (8 * itemsize)) // 128 * 128))

    if rows <= 8:
        tr = rows                        # full extent: always layout-legal
    else:
        tr = (budget_bytes // max(1, thw * itemsize)) // 8 * 8
        cap = max(8, (rows // min_steps) // 8 * 8)
        tr = max(8, min(tr, cap, rows // 8 * 8))
    return tr, thw


# ----------------------------------------------------------------------------
# Wrapper
# ----------------------------------------------------------------------------

def _project_global_track(global_track, weight, bias):
    """g = Linear(C, C)(global_track) as a (B, C) f32 array."""
    B, C = global_track.shape
    gt = global_track.astype(jnp.float32)
    w = weight.astype(jnp.float32)
    if C * C * 4 > 8 * 1024 * 1024:
        # Large weight: hoist the tiny FC to XLA to keep VMEM for x tiles.
        g = gt @ w.T
        if bias is not None:
            g = g + bias.astype(jnp.float32)
        return g

    b2d = (jnp.zeros((C,), jnp.float32) if bias is None
           else bias.astype(jnp.float32)).reshape(1, C)
    return pl.pallas_call(
        _fc_kernel,
        out_shape=jax.ShapeDtypeStruct((B, C), jnp.float32),
        grid_spec=pl.GridSpec(
            grid=(1,),
            in_specs=[
                pl.BlockSpec((B, C), lambda i: (0, 0)),
                pl.BlockSpec((C, C), lambda i: (0, 0)),
                pl.BlockSpec((1, C), lambda i: (0, 0)),
            ],
            out_specs=pl.BlockSpec((B, C), lambda i: (0, 0)),
        ),
        compiler_params=pltpu.CompilerParams(
            dimension_semantics=("arbitrary",),
            vmem_limit_bytes=32 * 1024 * 1024,
        ),
    )(gt, w, b2d)


def merge_layer(x, global_track, weight, bias=None, *, in_place=False):
    """Pallas implementation of MergeLayer.forward.

    x:            (B, C, H, W)
    global_track: (B, C) or None
    weight:       (C, C) PyTorch nn.Linear layout (out_features, in_features)
    bias:         (C,) or None (use_linear_bias=False)
    in_place:     alias the output onto x's buffer (only if caller no longer
                  needs x) — halves peak HBM footprint, same bandwidth.
    """
    if global_track is None:
        return x

    B, C, H, W = x.shape
    HW = H * W
    rows = B * C
    assert weight.shape == (C, C), weight.shape
    assert global_track.shape == (B, C), global_track.shape

    # Tiny FC projection (MXU kernel or XLA, see _project_global_track).
    g_col = _project_global_track(global_track, weight, bias).reshape(rows, 1)

    # Flattened row view: lane axis = HW (masked tail, if any, amortizes over
    # all B*C rows), sublane axis = B*C rows for fine-grained tiling.
    x2 = x.reshape(rows, HW)
    itemsize = jnp.dtype(x.dtype).itemsize

    tile_budget, vmem_limit = _vmem_budget()
    TR, THW = _pick_tiles(rows, HW, itemsize, tile_budget)
    grid = (pl.cdiv(rows, TR), pl.cdiv(HW, THW))

    out = pl.pallas_call(
        _bcast_add_kernel,
        out_shape=jax.ShapeDtypeStruct((rows, HW), x.dtype),
        grid_spec=pl.GridSpec(
            grid=grid,
            in_specs=[
                pl.BlockSpec((TR, 1), lambda i, j: (i, 0)),     # per-row add value
                pl.BlockSpec((TR, THW), lambda i, j: (i, j)),   # x tile
            ],
            out_specs=pl.BlockSpec((TR, THW), lambda i, j: (i, j)),
        ),
        compiler_params=pltpu.CompilerParams(
            dimension_semantics=("parallel", "parallel"),
            vmem_limit_bytes=vmem_limit,
        ),
        cost_estimate=pl.CostEstimate(
            flops=rows * HW,
            transcendentals=0,
            bytes_accessed=2 * rows * HW * itemsize + rows * 4,
        ),
        input_output_aliases=({1: 0} if in_place else {}),
    )(g_col, x2)

    return out.reshape(B, C, H, W)


# ----------------------------------------------------------------------------
# Self-test
# ----------------------------------------------------------------------------

if __name__ == "__main__":
    # Small shapes consistent with the module:
    #   x: (batch, channels, H, W), global_track: (batch, channels),
    #   Linear(channels, channels) weight/bias.
    batch = 2
    channels = 16
    H = W = 16

    key = jax.random.PRNGKey(0)
    k_x, k_g, k_w, k_b = jax.random.split(key, 4)

    x = jax.random.normal(k_x, (batch, channels, H, W), dtype=jnp.float32)
    global_track = jax.random.normal(k_g, (batch, channels), dtype=jnp.float32)
    weight = jax.random.normal(k_w, (channels, channels), dtype=jnp.float32) * 0.1
    bias = jax.random.normal(k_b, (channels,), dtype=jnp.float32) * 0.05

    # bootstrapping.use_linear_bias = True branch.
    out = jax.block_until_ready(merge_layer(x, global_track, weight, bias))
    g_ref = global_track @ weight.T + bias
    ref = x + g_ref[:, :, None, None]
    assert out.shape == x.shape
    assert jnp.allclose(out, ref, atol=1e-5, rtol=1e-5), (
        float(jnp.max(jnp.abs(out - ref))))

    # bootstrapping.use_linear_bias = False branch.
    out_nb = jax.block_until_ready(merge_layer(x, global_track, weight, None))
    ref_nb = x + (global_track @ weight.T)[:, :, None, None]
    assert jnp.allclose(out_nb, ref_nb, atol=1e-5, rtol=1e-5)

    # global_track = None branch: forward returns x unchanged (no kernel launch).
    out_none = jax.block_until_ready(merge_layer(x, None, weight, bias))
    assert jnp.array_equal(out_none, x)

    # Non-128-multiple spatial size (e.g. 14x14) to exercise the masked-tail path.
    x14 = jax.random.normal(k_x, (batch, channels, 14, 14), dtype=jnp.float32)
    out14 = jax.block_until_ready(merge_layer(x14, global_track, weight, bias))
    ref14 = x14 + g_ref[:, :, None, None]
    assert jnp.allclose(out14, ref14, atol=1e-5, rtol=1e-5)

    print("KERNEL_OK")
</pallas_src>

<mosaic_0001>
module attributes {stable_mosaic.version = 11 : i64} {
  func.func @_fc_kernel(%arg0: i32, %arg1: memref<2x16xf32, #tpu.memory_space<vmem>>, %arg2: memref<16x16xf32, #tpu.memory_space<vmem>>, %arg3: memref<1x16xf32, #tpu.memory_space<vmem>>, %arg4: memref<2x16xf32, #tpu.memory_space<vmem>>) attributes {dimension_semantics = [#tpu.dimension_semantics<arbitrary>], iteration_bounds = array<i64: 1>, scalar_prefetch = 0 : i64, scratch_operands = 0 : i64, tpu.core_type = #tpu.core_type<tc>, window_params = [{pipeline_mode = #tpu.pipeline_mode<synchronous>, transform_indices = @transform_0, window_bounds = array<i64: 2, 16>}, {pipeline_mode = #tpu.pipeline_mode<synchronous>, transform_indices = @transform_1, window_bounds = array<i64: 16, 16>}, {pipeline_mode = #tpu.pipeline_mode<synchronous>, transform_indices = @transform_2, window_bounds = array<i64: 1, 16>}, {pipeline_mode = #tpu.pipeline_mode<synchronous>, transform_indices = @transform_3, window_bounds = array<i64: 2, 16>}]} {
    %c0 = arith.constant 0 : index
    %c0_0 = arith.constant 0 : index
    %0 = vector.load %arg1[%c0, %c0_0] : memref<2x16xf32, #tpu.memory_space<vmem>>, vector<2x16xf32>
    %c0_1 = arith.constant 0 : index
    %c0_2 = arith.constant 0 : index
    %1 = vector.load %arg2[%c0_1, %c0_2] : memref<16x16xf32, #tpu.memory_space<vmem>>, vector<16x16xf32>
    %cst = arith.constant dense<0.000000e+00> : vector<2x16xf32>
    %2 = tpu.matmul %0, %1, %cst {dimension_numbers = #tpu.dot_dimension_numbers<[1], [1], [0], [0], [0, 0, 1, 0], [], []>} : vector<2x16xf32>, vector<16x16xf32>, vector<2x16xf32> -> vector<2x16xf32>
    %c0_3 = arith.constant 0 : index
    %c0_4 = arith.constant 0 : index
    %3 = vector.load %arg3[%c0_3, %c0_4] : memref<1x16xf32, #tpu.memory_space<vmem>>, vector<1x16xf32>
    %4 = vector.broadcast %3 : vector<1x16xf32> to vector<2x16xf32>
    %5 = arith.addf %2, %4 : vector<2x16xf32>
    %c0_5 = arith.constant 0 : index
    %c0_6 = arith.constant 0 : index
    %6 = vector.load %arg4[%c0_5, %c0_6] : memref<2x16xf32, #tpu.memory_space<vmem>>, vector<2x16xf32>
    tpu.vector_store %arg4[%c0_5, %c0_6], %5 {strides = array<i32>} : memref<2x16xf32, #tpu.memory_space<vmem>>, vector<2x16xf32>,
    return
  }
  func.func @transform_0(%arg0: i32) -> (i32, i32) {
    %c0_i32 = arith.constant 0 : i32
    %c0_i32_0 = arith.constant 0 : i32
    %c0_i32_1 = arith.constant 0 : i32
    return %c0_i32, %c0_i32_0 : i32, i32
  }
  func.func @transform_1(%arg0: i32) -> (i32, i32) {
    %c0_i32 = arith.constant 0 : i32
    %c0_i32_0 = arith.constant 0 : i32
    %c0_i32_1 = arith.constant 0 : i32
    return %c0_i32, %c0_i32_0 : i32, i32
  }
  func.func @transform_2(%arg0: i32) -> (i32, i32) {
    %c0_i32 = arith.constant 0 : i32
    %c0_i32_0 = arith.constant 0 : i32
    %c0_i32_1 = arith.constant 0 : i32
    return %c0_i32, %c0_i32_0 : i32, i32
  }
  func.func @transform_3(%arg0: i32) -> (i32, i32) {
    %c0_i32 = arith.constant 0 : i32
    %c0_i32_0 = arith.constant 0 : i32
    %c0_i32_1 = arith.constant 0 : i32
    return %c0_i32, %c0_i32_0 : i32, i32
  }
}

</mosaic_0001>

<bundles_post_ra>
// kernel: tpu_custom_call.1
= control target key start
LH: loop header
LB: loop body
LE: loop exit
PB: predicated region body
PF: predicated region fallthrough
CT: control target
= control target key end

     0   :  { %8 = vsyncpa [#allocation3], 0  ;;  %s321_s0 = inlined_call_operand.hbm [shape: f32[2,16], index: 0, kind: input, shape index: {}]   ;;  %s322_s1 = inlined_call_operand.hbm [shape: f32[16,16], index: 1, kind: input, shape index: {}]   ;;  %s323_s2 = inlined_call_operand.vmem [shape: f32[1,16], index: 2, kind: input, shape index: {}]   ;;  %s324_s3 = inlined_call_operand.hbm [shape: f32[2,16], index: 3, kind: output, shape index: {}]  }
   0x1   :  { %9 = vsyncpa [#allocation6], 0 }
   0x2   :  { %10 = vsyncpa [#allocation4], 0  ;;  %s247_s12 = smov [#allocation2]   ;;  %s248_s14 = smov [#allocation5]  }
   0x3   :  { %s17_s13 = sshll.u32 %s247_s12, 4  ;;  %s26_s15 = sshll.u32 %s248_s14, 4  ;;  %s18_s13 = int_to_ptr.vmem [resolvable:$true] %s17_s13  ;;  %s275_s15 = int_to_ptr.vmem [resolvable:$true] %s26_s15 }
   0x4   :  { %s175_s18 = scalar_lea.hbm %s321_s0, 32 }
   0x5   :  { %p176_p0 = scmp.ne.s32.totalorder %s321_s0, %s175_s18  ;;  %p179_p1 = scmp.lt.u32.totalorder %s175_s18, %s321_s0 }
   0x7   :  { %p181_p2 = pnand %p179_p1, %p176_p0 }
   0x9   :  { %184 = shalt.err (!%p181_p2)
}
   0xa   :  { %s185_s23 = scalar_lea.vmem %s18_s13, 32  ;;  %p190_p4 = scmp.lt.s32.totalorder %s18_s13, %s18_s13 }
   0xb   :  { %p186_p3 = scmp.ne.s32.totalorder %s18_s13, %s185_s23  ;;  %p191_p5 = scmp.lt.s32.totalorder %s185_s23, %s185_s23 }
   0xd   :  { %p192_p6 = por %p191_p5, %p190_p4 }
   0xf   :  { %p193_p7 = pnand %p192_p6, %p186_p3 }
  0x11   :  { %196 = shalt.err (!%p193_p7)
}
  0x12   :  { %20 = dma.hbm_to_vmem [thread:$0]  %s321_s0, 32, %s18_s13, [#allocation3]  }
  0x13   :  { %s197_s28 = scalar_lea.hbm %s322_s1, 256 }
  0x14   :  { %p198_p8 = scmp.ne.s32.totalorder %s322_s1, %s197_s28  ;;  %p201_p9 = scmp.lt.u32.totalorder %s197_s28, %s322_s1 }
  0x16   :  { %p203_p10 = pnand %p201_p9, %p198_p8 }
  0x18   :  { %206 = shalt.err (!%p203_p10)
}
  0x19   :  { %s207_s6 = scalar_lea.vmem %s275_s15, 256  ;;  %p212_p12 = scmp.lt.s32.totalorder %s275_s15, %s275_s15 }
  0x1a   :  { %p208_p11 = scmp.ne.s32.totalorder %s275_s15, %s207_s6  ;;  %p213_p13 = scmp.lt.s32.totalorder %s207_s6, %s207_s6 }
  0x1c   :  { %p214_p0 = por %p213_p13, %p212_p12 }
  0x1e   :  { %p215_p1 = pnand %p214_p0, %p208_p11 }
  0x20   :  { %218 = shalt.err (!%p215_p1)
}
  0x21   :  { %s249_s0 = smov 128   ;;  %s250_s7 = smov 8  }
  0x22   :  { %32 = dma.hbm_to_vmem [thread:$0]  %s322_s1, 256, %s275_s15, [#allocation6], %s249_s0, %s249_s0, %s250_s7  }
  0x23   :  { %241 = dma.done.wait [#allocation3], 32  }
  0x24   :  { %242 = vsyncadd [#allocation3], 4294967264 }
  0x25   :  { %243 = dma.done.wait [#allocation6], 256  }
  0x26   :  { %244 = vsyncadd [#allocation6], 4294967040  ;;  %v251_v0 = vmov 0.0|0.0   ;;  %vm252_vm0 = vmmov 0   ;;  %v253_v1 = vmov 0.0   ;;  %vm51_vm1 = vcmask 130048  }
  0x27   :  { %163 = vmatprep.subr.bf16.mxu0 %v251_v0  ;;  %160 = vmatprep.mubr.msk.f32.mxu0 %vm252_vm0, %v253_v1  ;;  %v42_v2 = vld [vmem:[#allocation5] sm:$0xff]  ;;  %v43_v3 = vld [vmem:[#allocation5 + $0x8] sm:$0xff]  ;;  %vm165_vm2 = vmpackc.low %vm51_vm1, %vm51_vm1  ;;  %s254_s1 = smov [#allocation7]   ;;  %vm131_vm3 = vcmask 123904  }
  0x28   :  { %v164_v4 = vpack.c.bf16 %v43_v3, %v42_v2  ;;  %v41_v5 = vld [vmem:[#allocation2] sm:$0x3]  ;;  %s139_s12 = sshll.u32 %s254_s1, 4  ;;  %s140_s12 = int_to_ptr.vmem [resolvable:$true] %s139_s12 }
  0x29   :  { %v149_v6 = vld [vmem:[%s323_s2] ss:$0 sm:$0xff]  ;;  %s219_s13 = scalar_lea.vmem %s140_s12, 32  ;;  %p224_p3 = scmp.lt.s32.totalorder %s140_s12, %s140_s12 }
  0x2a   :  { %166 = vmatpush3.bf16.xpose.msk.msra.mxu0 %vm165_vm2, %v164_v4  ;;  %p220_p2 = scmp.ne.s32.totalorder %s140_s12, %s219_s13  ;;  %p225_p4 = scmp.lt.s32.totalorder %s219_s13, %s219_s13 }
  0x2c   :  { %p226_p5 = por %p225_p4, %p224_p3 }
  0x2e   :  { %p227_p6 = pnand %p226_p5, %p220_p2 }
  0x31   :  { %161 = vmatmul.mubr.msk.f32.vlgmr.msra.gmra.mrb[0].mxu0 %vm51_vm1, %v41_v5 }
 0x104   :  { %v127_v7 = vpop.f32.mrb[0].mxu0 }
 0x105   :  { %v128_v8 = vadd.f32 %v149_v6, %v127_v7  ;;  %v162_v9 = vpop.f32.mrb[1].mxu0 }
 0x107   :  { %132 = vst.msk [vmem:[#allocation7] sm:$0x3] %vm131_vm3, %v128_v8 }
 0x108   :  { %230 = shalt.err (!%p227_p6)
}
 0x109   :  { %s231_s16 = scalar_lea.hbm %s324_s3, 32 }
 0x10a   :  { %p232_p7 = scmp.ne.s32.totalorder %s324_s3, %s231_s16  ;;  %p235_p8 = scmp.lt.u32.totalorder %s231_s16, %s324_s3 }
 0x10c   :  { %p237_p9 = pnand %p235_p8, %p232_p7 }
 0x10e   :  { %240 = shalt.err (!%p237_p9)
}
 0x10f   :  { %142 = dma.vmem_to_hbm [thread:$0]  %s140_s12, 32, %s324_s3, [#allocation4]  }
 0x110   :  { %245 = dma.done.wait [#allocation4], 32  }
 0x111   :  { %246 = vsyncadd [#allocation4], 4294967264 }
 0x112   :  { %146 = vsyncpa [#allocation3], 1 }
 0x113   :  { %147 = vsyncpa [#allocation6], 1 }
 0x114   :  { %148 = vsyncpa [#allocation4], 1 }

</bundles_post_ra>
